<compile_context>
chip_gen: v5e
topology: v5e:2x2
jax: 0.10.0
libtpu: 0.0.40
codegen_flags: <defaults>
</compile_context>

<pallas_src>
import jax
import jax.numpy as jnp
import numpy as np
from jax.experimental import pallas as pl
from jax.experimental.pallas import tpu as pltpu


def _round_up(x: int, m: int) -> int:
    return (x + m - 1) // m * m


def _rnn_cell_kernel(x_ref, h_ref, int_ref, wih_ref, whh_ref, b_ref, out_ref):
    """hy = relu(x @ Wih^T + h @ Whh^T + internal + bias) for one batch-row tile."""
    acc = jnp.dot(x_ref[...], wih_ref[...], preferred_element_type=jnp.float32)
    acc = acc + jnp.dot(h_ref[...], whh_ref[...], preferred_element_type=jnp.float32)
    acc = acc + int_ref[...] + b_ref[...]
    out_ref[...] = jnp.maximum(acc, 0.0).astype(out_ref.dtype)


def rnn_cell_forward(inp, internal, state, weight_ih, weight_hh, bias, *,
                     compute_dtype=jnp.float32, block_rows=256):
    """Pallas-TPU RNNCell.forward.

    inp:       (B, input_size)
    internal:  (B, hidden)
    state:     tuple whose first element is hx (B, hidden)   [matches torch `state[0]`]
    weight_ih: (hidden, input_size), weight_hh: (hidden, hidden), bias: (hidden,)
    Returns (hy, (hy,)) with hy: (B, hidden).
    """
    hx = state[0]
    B, input_size = inp.shape
    hidden = weight_hh.shape[0]
    out_dtype = inp.dtype

    # MXU-layout weights (K, N). One-time tiny transform; activations stay in their
    # native (batch, feature) layout -> no host transposes of the big operands.
    wih_t = weight_ih.T.astype(compute_dtype)              # (in, hid)
    whh_t = weight_hh.T.astype(compute_dtype)              # (hid, hid)
    bias2d = bias.reshape(1, hidden).astype(jnp.float32)

    # Batch-row tiling (rows are the MXU LHS rows). Pad to a multiple of 8 sublanes.
    tb = min(block_rows, _round_up(B, 8))
    Bp = _round_up(B, tb)

    x_k = inp.astype(compute_dtype)
    h_k = hx.astype(compute_dtype)
    int_k = internal.astype(jnp.float32)   # added post-matmul, keep f32
    if Bp != B:
        pad = Bp - B
        x_k = jnp.pad(x_k, ((0, pad), (0, 0)))
        h_k = jnp.pad(h_k, ((0, pad), (0, 0)))
        int_k = jnp.pad(int_k, ((0, pad), (0, 0)))

    hy_p = pl.pallas_call(
        _rnn_cell_kernel,
        out_shape=jax.ShapeDtypeStruct((Bp, hidden), out_dtype),
        grid_spec=pltpu.PrefetchScalarGridSpec(
            num_scalar_prefetch=0,
            grid=(Bp // tb,),
            in_specs=[
                pl.BlockSpec((tb, input_size), lambda i: (i, 0)),       # x tile
                pl.BlockSpec((tb, hidden), lambda i: (i, 0)),           # h tile
                pl.BlockSpec((tb, hidden), lambda i: (i, 0)),           # internal tile
                pl.BlockSpec((input_size, hidden), lambda i: (0, 0)),   # W_ih^T (resident)
                pl.BlockSpec((hidden, hidden), lambda i: (0, 0)),       # W_hh^T (resident)
                pl.BlockSpec((1, hidden), lambda i: (0, 0)),            # bias (resident)
            ],
            out_specs=pl.BlockSpec((tb, hidden), lambda i: (i, 0)),     # lane-dense store
        ),
        compiler_params=pltpu.CompilerParams(
            dimension_semantics=("parallel",),      # independent batch tiles (2 TCs on v7x)
            vmem_limit_bytes=32 * 1024 * 1024,
        ),
    )(x_k, h_k, int_k, wih_t, whh_t, bias2d)

    hy = hy_p[:B] if Bp != B else hy_p
    return hy, (hy,)


def rnn_cell_reference(inp, internal, state, weight_ih, weight_hh, bias):
    """Pure-JAX (f32) replica of the PyTorch RNNCell forward."""
    hx = state[0]
    x = inp @ weight_ih.T + hx @ weight_hh.T
    hy = jnp.maximum(x + internal + bias, 0.0)
    return hy, (hy,)


if __name__ == "__main__":
    key = jax.random.PRNGKey(0)
    ks = jax.random.split(key, 10)

    # Small but lane-dense config (hidden = 128 lanes).
    batch, input_size, hidden = 16, 64, 128

    rk_i = 1.0 / np.sqrt(input_size)
    rk_h = 1.0 / np.sqrt(hidden)
    weight_ih = jax.random.uniform(ks[0], (hidden, input_size), jnp.float32, -rk_i, rk_i)
    weight_hh = jax.random.uniform(ks[1], (hidden, hidden), jnp.float32, -rk_h, rk_h)
    # Module initializes bias to zeros; use a small nonzero bias to exercise the add path.
    bias = jax.random.uniform(ks[2], (hidden,), jnp.float32, -0.05, 0.05)

    x = jax.random.normal(ks[3], (batch, input_size), jnp.float32)
    internal = jax.random.normal(ks[4], (batch, hidden), jnp.float32) * 0.1
    h0 = jax.random.normal(ks[5], (batch, hidden), jnp.float32) * 0.1
    state = (h0,)

    ref_hy, _ = rnn_cell_reference(x, internal, state, weight_ih, weight_hh, bias)

    # ---- f32 path (exact semantics check) ----
    hy, new_state = rnn_cell_forward(x, internal, state, weight_ih, weight_hh, bias,
                                     compute_dtype=jnp.float32)
    hy = jax.block_until_ready(hy)
    assert hy.shape == (batch, hidden)
    np.testing.assert_allclose(np.asarray(hy), np.asarray(ref_hy), rtol=1e-5, atol=1e-5)
    np.testing.assert_allclose(np.asarray(new_state[0]), np.asarray(ref_hy),
                               rtol=1e-5, atol=1e-5)

    # ---- bf16 matmul operands, f32 accumulation (perf path) ----
    hy_bf, _ = rnn_cell_forward(x, internal, state, weight_ih, weight_hh, bias,
                                compute_dtype=jnp.bfloat16)
    hy_bf = jax.block_until_ready(hy_bf)
    np.testing.assert_allclose(np.asarray(hy_bf), np.asarray(ref_hy), rtol=5e-2, atol=5e-2)

    # ---- ragged batch (wrapper padding path), small hidden ----
    b2, in2, hid2 = 5, 16, 32
    w_ih2 = jax.random.uniform(ks[6], (hid2, in2), jnp.float32,
                               -1.0 / np.sqrt(in2), 1.0 / np.sqrt(in2))
    w_hh2 = jax.random.uniform(ks[7], (hid2, hid2), jnp.float32,
                               -1.0 / np.sqrt(hid2), 1.0 / np.sqrt(hid2))
    bias2 = jax.random.uniform(ks[8], (hid2,), jnp.float32, -0.05, 0.05)
    x2 = jax.random.normal(ks[9], (b2, in2), jnp.float32)
    int2 = jnp.ones((b2, hid2), jnp.float32) * 0.05
    h02 = jnp.zeros((b2, hid2), jnp.float32)

    hy2, _ = rnn_cell_forward(x2, int2, (h02,), w_ih2, w_hh2, bias2,
                              compute_dtype=jnp.float32)
    hy2 = jax.block_until_ready(hy2)
    ref2, _ = rnn_cell_reference(x2, int2, (h02,), w_ih2, w_hh2, bias2)
    assert hy2.shape == (b2, hid2)
    np.testing.assert_allclose(np.asarray(hy2), np.asarray(ref2), rtol=1e-5, atol=1e-5)

    print("KERNEL_OK")
</pallas_src>

<mosaic_0001>
module attributes {stable_mosaic.version = 11 : i64} {
  func.func @_rnn_cell_kernel(%arg0: i32, %arg1: memref<16x64xf32, #tpu.memory_space<vmem>>, %arg2: memref<16x128xf32, #tpu.memory_space<vmem>>, %arg3: memref<16x128xf32, #tpu.memory_space<vmem>>, %arg4: memref<64x128xf32, #tpu.memory_space<vmem>>, %arg5: memref<128x128xf32, #tpu.memory_space<vmem>>, %arg6: memref<1x128xf32, #tpu.memory_space<vmem>>, %arg7: memref<16x128xf32, #tpu.memory_space<vmem>>) attributes {dimension_semantics = [#tpu.dimension_semantics<parallel>], iteration_bounds = array<i64: 1>, scalar_prefetch = 0 : i64, scratch_operands = 0 : i64, tpu.core_type = #tpu.core_type<tc>, window_params = [{transform_indices = @transform_0, window_bounds = array<i64: 16, 64>}, {transform_indices = @transform_1, window_bounds = array<i64: 16, 128>}, {transform_indices = @transform_2, window_bounds = array<i64: 16, 128>}, {pipeline_mode = #tpu.pipeline_mode<synchronous>, transform_indices = @transform_3, window_bounds = array<i64: 64, 128>}, {pipeline_mode = #tpu.pipeline_mode<synchronous>, transform_indices = @transform_4, window_bounds = array<i64: 128, 128>}, {pipeline_mode = #tpu.pipeline_mode<synchronous>, transform_indices = @transform_5, window_bounds = array<i64: 1, 128>}, {transform_indices = @transform_6, window_bounds = array<i64: 16, 128>}]} {
    %c0 = arith.constant 0 : index
    %c0_0 = arith.constant 0 : index
    %0 = vector.load %arg1[%c0, %c0_0] : memref<16x64xf32, #tpu.memory_space<vmem>>, vector<16x64xf32>
    %c0_1 = arith.constant 0 : index
    %c0_2 = arith.constant 0 : index
    %1 = vector.load %arg4[%c0_1, %c0_2] : memref<64x128xf32, #tpu.memory_space<vmem>>, vector<64x128xf32>
    %cst = arith.constant dense<0.000000e+00> : vector<16x128xf32>
    %2 = tpu.matmul %0, %1, %cst {dimension_numbers = #tpu.dot_dimension_numbers<[1], [0], [0], [1], [0, 0, 1, 1], [], []>} : vector<16x64xf32>, vector<64x128xf32>, vector<16x128xf32> -> vector<16x128xf32>
    %c0_3 = arith.constant 0 : index
    %c0_4 = arith.constant 0 : index
    %3 = vector.load %arg2[%c0_3, %c0_4] : memref<16x128xf32, #tpu.memory_space<vmem>>, vector<16x128xf32>
    %c0_5 = arith.constant 0 : index
    %c0_6 = arith.constant 0 : index
    %4 = vector.load %arg5[%c0_5, %c0_6] : memref<128x128xf32, #tpu.memory_space<vmem>>, vector<128x128xf32>
    %cst_7 = arith.constant dense<0.000000e+00> : vector<16x128xf32>
    %5 = tpu.matmul %3, %4, %cst_7 {dimension_numbers = #tpu.dot_dimension_numbers<[1], [0], [0], [1], [0, 0, 1, 1], [], []>} : vector<16x128xf32>, vector<128x128xf32>, vector<16x128xf32> -> vector<16x128xf32>
    %6 = arith.addf %2, %5 : vector<16x128xf32>
    %c0_8 = arith.constant 0 : index
    %c0_9 = arith.constant 0 : index
    %7 = vector.load %arg3[%c0_8, %c0_9] : memref<16x128xf32, #tpu.memory_space<vmem>>, vector<16x128xf32>
    %8 = arith.addf %6, %7 : vector<16x128xf32>
    %c0_10 = arith.constant 0 : index
    %c0_11 = arith.constant 0 : index
    %9 = vector.load %arg6[%c0_10, %c0_11] : memref<1x128xf32, #tpu.memory_space<vmem>>, vector<1x128xf32>
    %10 = vector.broadcast %9 : vector<1x128xf32> to vector<16x128xf32>
    %11 = arith.addf %8, %10 : vector<16x128xf32>
    %cst_12 = arith.constant 0.000000e+00 : f32
    %12 = vector.broadcast %cst_12 : f32 to vector<16x128xf32>
    %13 = arith.maximumf %11, %12 : vector<16x128xf32>
    %c0_13 = arith.constant 0 : index
    %c0_14 = arith.constant 0 : index
    %14 = vector.load %arg7[%c0_13, %c0_14] : memref<16x128xf32, #tpu.memory_space<vmem>>, vector<16x128xf32>
    tpu.vector_store %arg7[%c0_13, %c0_14], %13 {strides = array<i32>} : memref<16x128xf32, #tpu.memory_space<vmem>>, vector<16x128xf32>,
    return
  }
  func.func @transform_0(%arg0: i32) -> (i32, i32) {
    %c0_i32 = arith.constant 0 : i32
    %c0_i32_0 = arith.constant 0 : i32
    return %arg0, %c0_i32 : i32, i32
  }
  func.func @transform_1(%arg0: i32) -> (i32, i32) {
    %c0_i32 = arith.constant 0 : i32
    %c0_i32_0 = arith.constant 0 : i32
    return %arg0, %c0_i32 : i32, i32
  }
  func.func @transform_2(%arg0: i32) -> (i32, i32) {
    %c0_i32 = arith.constant 0 : i32
    %c0_i32_0 = arith.constant 0 : i32
    return %arg0, %c0_i32 : i32, i32
  }
  func.func @transform_3(%arg0: i32) -> (i32, i32) {
    %c0_i32 = arith.constant 0 : i32
    %c0_i32_0 = arith.constant 0 : i32
    %c0_i32_1 = arith.constant 0 : i32
    return %c0_i32, %c0_i32_0 : i32, i32
  }
  func.func @transform_4(%arg0: i32) -> (i32, i32) {
    %c0_i32 = arith.constant 0 : i32
    %c0_i32_0 = arith.constant 0 : i32
    %c0_i32_1 = arith.constant 0 : i32
    return %c0_i32, %c0_i32_0 : i32, i32
  }
  func.func @transform_5(%arg0: i32) -> (i32, i32) {
    %c0_i32 = arith.constant 0 : i32
    %c0_i32_0 = arith.constant 0 : i32
    %c0_i32_1 = arith.constant 0 : i32
    return %c0_i32, %c0_i32_0 : i32, i32
  }
  func.func @transform_6(%arg0: i32) -> (i32, i32) {
    %c0_i32 = arith.constant 0 : i32
    %c0_i32_0 = arith.constant 0 : i32
    return %arg0, %c0_i32 : i32, i32
  }
}

</mosaic_0001>

<bundles_post_ra>
// kernel: tpu_custom_call.1
= control target key start
LH: loop header
LB: loop body
LE: loop exit
PB: predicated region body
PF: predicated region fallthrough
CT: control target
= control target key end

     0   :  { %11 = vsyncpa [#allocation3], 0  ;;  %s481_s0 = inlined_call_operand.hbm [shape: f32[16,64], index: 0, kind: input, shape index: {}]   ;;  %s482_s1 = inlined_call_operand.hbm [shape: f32[16,128], index: 1, kind: input, shape index: {}]   ;;  %s483_s2 = inlined_call_operand.hbm [shape: f32[16,128], index: 2, kind: input, shape index: {}]   ;;  %s484_s3 = inlined_call_operand.hbm [shape: f32[64,128], index: 3, kind: input, shape index: {}]   ;;  %s485_s4 = inlined_call_operand.hbm [shape: f32[128,128], index: 4, kind: input, shape index: {}]   ;;  %s486_s5 = inlined_call_operand.vmem [shape: f32[1,128], index: 5, kind: input, shape index: {}]   ;;  %s487_s6 = inlined_call_operand.hbm [shape: f32[16,128], index: 6, kind: output, shape index: {}]  }
   0x1   :  { %12 = vsyncpa [#allocation6], 0 }
   0x2   :  { %13 = vsyncpa [#allocation9], 0 }
   0x3   :  { %14 = vsyncpa [#allocation4], 0  ;;  %s32_s23 = sshll.u32 %s482_s1, 4  ;;  %s397_s24 = smov [#allocation5]   ;;  %s33_s23 = int_to_ptr.hbm [resolvable:$true] %s32_s23 }
   0x4   :  { %s34_s25 = sshll.u32 %s397_s24, 4  ;;  %s58_s28 = sshll.u32 %s484_s3, 4  ;;  %s35_s25 = int_to_ptr.vmem [resolvable:$true] %s34_s25  ;;  %s59_s28 = int_to_ptr.hbm [resolvable:$true] %s58_s28 }
   0x5   :  { %s398_s29 = smov 128   ;;  %s399_s30 = smov 8  }
   0x6   :  { %40 = dma.hbm_to_vmem [thread:$0]  %s33_s23, 256, %s35_s25, [#allocation6], %s398_s29, %s398_s29, %s399_s30  }
   0x7   :  { %s400_s7 = smov [#allocation8]   ;;  %s19_s1 = sshll.u32 %s481_s0, 4  ;;  %s20_s1 = int_to_ptr.hbm [resolvable:$true] %s19_s1 }
   0x8   :  { %s60_s8 = sshll.u32 %s400_s7, 4  ;;  %s45_s12 = sshll.u32 %s483_s2, 4  ;;  %s61_s8 = int_to_ptr.vmem [resolvable:$true] %s60_s8  ;;  %s46_s12 = int_to_ptr.hbm [resolvable:$true] %s45_s12 }
   0x9   :  { %66 = dma.hbm_to_vmem [thread:$0]  %s59_s28, 1024, %s61_s8, [#allocation9], %s398_s29, %s398_s29, %s399_s30  }
   0xa   :  { %s401_s13 = smov [#allocation2]   ;;  %s402_s15 = smov [#allocation7]  }
   0xb   :  { %s21_s14 = sshll.u32 %s401_s13, 4  ;;  %s47_s0 = sshll.u32 %s402_s15, 4  ;;  %s22_s14 = int_to_ptr.vmem [resolvable:$true] %s21_s14  ;;  %s48_s0 = int_to_ptr.vmem [resolvable:$true] %s47_s0 }
   0xc   :  { %27 = dma.hbm_to_vmem [thread:$0]  %s20_s1, 256, %s22_s14, [#allocation3], %s398_s29, %s398_s29, %s399_s30  }
   0xd   :  { %s71_s18 = sshll.u32 %s485_s4, 4  ;;  %s403_s2 = smov [#allocation10]   ;;  %s72_s18 = int_to_ptr.hbm [resolvable:$true] %s71_s18 }
   0xe   :  { %53 = dma.hbm_to_vmem [thread:$0]  %s46_s12, 256, %s48_s0, [#allocation6], %s398_s29, %s398_s29, %s399_s30  }
   0xf   :  { %s73_s19 = sshll.u32 %s403_s2, 4  ;;  %s74_s19 = int_to_ptr.vmem [resolvable:$true] %s73_s19 }
  0x10   :  { %79 = dma.hbm_to_vmem [thread:$0]  %s72_s18, 2048, %s74_s19, [#allocation9], %s398_s29, %s398_s29, %s399_s30  }
  0x11   :  { %389 = dma.done.wait [#allocation3], 256  }
  0x12   :  { %390 = vsyncadd [#allocation3], 4294967040 }
  0x13   :  { %391 = dma.done.wait [#allocation6], 512  }
  0x14   :  { %392 = vsyncadd [#allocation6], 4294966784 }
  0x15   :  { %393 = dma.done.wait [#allocation9], 3072  }
  0x16   :  { %394 = vsyncadd [#allocation9], 4294964224  ;;  %v129_v0 = vld [vmem:[#allocation10 + $0x78] sm:$0xff]  ;;  %v128_v1 = vld [vmem:[#allocation10 + $0x70] sm:$0xff]  ;;  %vm153_vm0 = vcmask 523264   ;;  %s404_s21 = smov [#allocation11]  }
  0x17   :  { %130 = vmatpush.msra.mxu0 %v129_v0  ;;  %220 = vmatpush.msra.mxu2 %v129_v0  ;;  %v127_v2 = vld [vmem:[#allocation10 + $0x68] sm:$0xff]  ;;  %v111_v3 = vld [vmem:[#allocation8 + $0x38] sm:$0xff]  ;;  %v110_v4 = vld [vmem:[#allocation8 + $0x30] sm:$0xff]  ;;  %s201_s22 = sshll.u32 %s404_s21, 4  ;;  %s203_s25 = sshll.u32 %s487_s6, 4  ;;  %s202_s22 = int_to_ptr.vmem [resolvable:$true] %s201_s22  ;;  %s204_s25 = int_to_ptr.hbm [resolvable:$true] %s203_s25 }
  0x18   :  { %v126_v5 = vld [vmem:[#allocation10 + $0x60] sm:$0xff]  ;;  %168 = vmatpush.msra.mxu1 %v111_v3  ;;  %v109_v6 = vld [vmem:[#allocation8 + $0x28] sm:$0xff]  ;;  %v125_v7 = vld [vmem:[#allocation10 + $0x58] sm:$0xff] }
  0x19   :  { %131 = vmatpush.msra.mxu0 %v128_v1  ;;  %221 = vmatpush.msra.mxu2 %v128_v1  ;;  %v108_v8 = vld [vmem:[#allocation8 + $0x20] sm:$0xff]  ;;  %v124_v9 = vld [vmem:[#allocation10 + $0x50] sm:$0xff]  ;;  %v107_v10 = vld [vmem:[#allocation8 + $0x18] sm:$0xff] }
  0x1a   :  { %169 = vmatpush.msra.mxu1 %v110_v4  ;;  %v123_v11 = vld [vmem:[#allocation10 + $0x48] sm:$0xff]  ;;  %v106_v12 = vld [vmem:[#allocation8 + $0x10] sm:$0xff]  ;;  %v122_v13 = vld [vmem:[#allocation10 + $0x40] sm:$0xff] }
  0x1b   :  { %132 = vmatpush.msra.mxu0 %v127_v2  ;;  %222 = vmatpush.msra.mxu2 %v127_v2  ;;  %v105_v14 = vld [vmem:[#allocation8 + $0x8] sm:$0xff]  ;;  %v121_v15 = vld [vmem:[#allocation10 + $0x38] sm:$0xff]  ;;  %v104_v16 = vld [vmem:[#allocation8] sm:$0xff] }
  0x1c   :  { %170 = vmatpush.msra.mxu1 %v109_v6  ;;  %v120_v17 = vld [vmem:[#allocation10 + $0x30] sm:$0xff]  ;;  %v119_v19 = vld [vmem:[#allocation10 + $0x28] sm:$0xff]  ;;  %v118_v20 = vld [vmem:[#allocation10 + $0x20] sm:$0xff] }
  0x1d   :  { %133 = vmatpush.msra.mxu0 %v126_v5  ;;  %223 = vmatpush.msra.mxu2 %v126_v5  ;;  %v102_v18 = vld [vmem:[#allocation2] sm:$0xff]  ;;  %v117_v21 = vld [vmem:[#allocation10 + $0x18] sm:$0xff]  ;;  %v115_v24 = vld [vmem:[#allocation10 + $0x8] sm:$0xff] }
  0x1e   :  { %171 = vmatpush.msra.mxu1 %v108_v8  ;;  %v116_v22 = vld [vmem:[#allocation10 + $0x10] sm:$0xff]  ;;  %v103_v23 = vld [vmem:[#allocation2 + $0x8] sm:$0xff]  ;;  %v114_v25 = vld [vmem:[#allocation10] sm:$0xff] }
  0x1f   :  { %134 = vmatpush.msra.mxu0 %v125_v7  ;;  %224 = vmatpush.msra.mxu2 %v125_v7  ;;  %v112_v26 = vld [vmem:[#allocation5] sm:$0xff]  ;;  %v113_v27 = vld [vmem:[#allocation5 + $0x8] sm:$0xff]  ;;  %v183_v30 = vld [vmem:[#allocation7] sm:$0xff] }
  0x20   :  { %172 = vmatpush.msra.mxu1 %v107_v10  ;;  %v244_v32 = vld [vmem:[%s486_s5] ss:$0 sm:$0xff]  ;;  %v184_v37 = vld [vmem:[#allocation7 + $0x8] sm:$0xff] }
  0x21   :  { %135 = vmatpush.msra.mxu0 %v124_v9  ;;  %225 = vmatpush.msra.mxu2 %v124_v9 }
  0x22   :  { %173 = vmatpush.msra.mxu1 %v106_v12 }
  0x23   :  { %136 = vmatpush.msra.mxu0 %v123_v11  ;;  %226 = vmatpush.msra.mxu2 %v123_v11 }
  0x24   :  { %174 = vmatpush.msra.mxu1 %v105_v14 }
  0x25   :  { %137 = vmatpush.msra.mxu0 %v122_v13  ;;  %227 = vmatpush.msra.mxu2 %v122_v13 }
  0x26   :  { %175 = vmatpush.msra.mxu1 %v104_v16 }
  0x27   :  { %138 = vmatpush.msra.mxu0 %v121_v15  ;;  %228 = vmatpush.msra.mxu2 %v121_v15 }
  0x28   :  { %218 = vmatmul.msk.f32.vlgmr.msra.gmra.mxu1 %vm153_vm0, %v102_v18 }
  0x29   :  { %139 = vmatpush.msra.mxu0 %v120_v17  ;;  %229 = vmatpush.msra.mxu2 %v120_v17 }
  0x2b   :  { %140 = vmatpush.msra.mxu0 %v119_v19  ;;  %230 = vmatpush.msra.mxu2 %v119_v19 }
  0x2d   :  { %141 = vmatpush.msra.mxu0 %v118_v20  ;;  %231 = vmatpush.msra.mxu2 %v118_v20 }
  0x2f   :  { %142 = vmatpush.msra.mxu0 %v117_v21  ;;  %232 = vmatpush.msra.mxu2 %v117_v21 }
  0x30   :  { %219 = vmatmul.msk.f32.gmra.mxu1 %vm153_vm0, %v103_v23 }
  0x31   :  { %143 = vmatpush.msra.mxu0 %v116_v22  ;;  %233 = vmatpush.msra.mxu2 %v116_v22 }
  0x33   :  { %144 = vmatpush.msra.mxu0 %v115_v24  ;;  %234 = vmatpush.msra.mxu2 %v115_v24 }
  0x35   :  { %145 = vmatpush.msra.mxu0 %v114_v25  ;;  %235 = vmatpush.msra.mxu2 %v114_v25 }
  0x36   :  { %146 = vmatmul.f32.vlgmr.msra.gmra.mxu0 %v112_v26  ;;  %149 = vmatmul.f32.vlgmr.msra.gmra.mxu2 %v113_v27 }
  0xa5   :  { %v177_v28 = vpop.f32.mrf.mxu1 }
  0xad   :  { %v180_v34 = vpop.f32.mrf.mxu1 }
  0xb3   :  { %v147_v29 = vpop.f32.mrf.mxu0 }
  0xb4   :  { %v178_v31 = vadd.f32 %v177_v28, %v147_v29 }
  0xb6   :  { %v185_v33 = vadd.f32 %v183_v30, %v178_v31 }
  0xb8   :  { %v191_v35 = vadd.f32 %v244_v32, %v185_v33 }
  0xb9   :  { %v150_v36 = vpop.f32.mrf.mxu2 }
  0xba   :  { %v193_v38 = vmax.f32 %v191_v35, 0.0  ;;  %v181_v39 = vadd.f32 %v180_v34, %v150_v36 }
  0xbc   :  { %195 = vst [vmem:[#allocation11] sm:$0xff] %v193_v38  ;;  %v186_v40 = vadd.f32 %v184_v37, %v181_v39 }
  0xbe   :  { %v192_v41 = vadd.f32 %v244_v32, %v186_v40 }
  0xc0   :  { %v194_v42 = vmax.f32 %v192_v41, 0.0 }
  0xc2   :  { %196 = vst [vmem:[#allocation11 + $0x8] sm:$0xff] %v194_v42 }
  0xc3   :  { %209 = dma.vmem_to_hbm [thread:$0]  %s202_s22, 256, %s204_s25, [#allocation4], %s398_s29, %s398_s29, %s399_s30  }
  0xc4   :  { %395 = dma.done.wait [#allocation4], 256  }
  0xc5   :  { %396 = vsyncadd [#allocation4], 4294967040 }
  0xc6   :  { %214 = vsyncpa [#allocation3], 1 }
  0xc7   :  { %215 = vsyncpa [#allocation6], 1 }
  0xc8   :  { %216 = vsyncpa [#allocation9], 1 }
  0xc9   :  { %217 = vsyncpa [#allocation4], 1 }

</bundles_post_ra>
